<compile_context>
chip_gen: v7x
topology: tpu7x:2x2x1
jax: 0.10.0
libtpu: 0.0.40
codegen_flags: <defaults>
</compile_context>

<pallas_src>
import functools

import jax
import jax.numpy as jnp
from jax.experimental import pallas as pl
from jax.experimental.pallas import tpu as pltpu


def _focal_loss_kernel(*refs, gamma, has_alpha, n_total, tile_n):
    # refs: (x_ref, t_ref, [w_ref], o_ref)
    #   x_ref: (tile_n, C) logits (native dtype) in VMEM
    #   t_ref: (tile_n, 1) int32 targets in VMEM (ragged last tile: garbage rows)
    #   w_ref: (1, C) f32 class weights (only when has_alpha)
    #   o_ref: (1, 8, 128) f32 output block; partial sum broadcast into it
    if has_alpha:
        x_ref, t_ref, w_ref, o_ref = refs
    else:
        x_ref, t_ref, o_ref = refs
        w_ref = None

    x = x_ref[...].astype(jnp.float32)                 # (tile_n, C)
    t = t_ref[...]                                     # (tile_n, 1) int32
    tn, c = x.shape

    col = jax.lax.broadcasted_iota(jnp.int32, (tn, c), 1)
    is_t = col == t                                    # (tile_n, C) bool

    # Numerically stable log-sum-exp per row.
    row_max = jnp.max(x, axis=-1, keepdims=True)                       # (tile_n, 1)
    ex = jnp.exp(x - row_max)                                          # (tile_n, C)
    sum_exp = jnp.sum(ex, axis=-1, keepdims=True)                      # (tile_n, 1)
    lse = jnp.log(sum_exp) + row_max                                   # (tile_n, 1)

    # x[row, t[row]] via masked select + reduce (no bool->f32 cast, no mul).
    x_t = jnp.sum(jnp.where(is_t, x, 0.0), axis=-1, keepdims=True)     # (tile_n, 1)
    nll = lse - x_t                                                    # (tile_n, 1)

    if has_alpha:
        # F.cross_entropy(..., reduction='none', weight=alpha):
        #   ce_i = alpha[y_i] * (logsumexp(x_i) - x_i[y_i])
        w = w_ref[...].astype(jnp.float32)                             # (1, C)
        w_t = jnp.sum(jnp.where(is_t, w, 0.0), axis=-1, keepdims=True) # (tile_n, 1)
        ce = w_t * nll
        p_t = jnp.exp(-ce)
    else:
        ce = nll
        # p_t = exp(-nll) = exp(x_t - lse) = ex[row, t[row]] / sum_exp; reuse ex.
        ex_t = jnp.sum(jnp.where(is_t, ex, 0.0), axis=-1, keepdims=True)
        p_t = ex_t / sum_exp

    one_m = jnp.maximum(1.0 - p_t, 0.0)   # clamp: ce can round to a tiny negative
    if float(gamma) == int(gamma):
        factor = one_m ** int(gamma)       # lax.integer_pow -> cheap VPU muls
    else:
        factor = one_m ** jnp.float32(gamma)
    loss = factor * ce                                                 # (tile_n, 1)

    # Mask ragged last-tile rows (block may overrun N; OOB rows hold garbage,
    # possibly NaN after exp — jnp.where discards them before the reduce).
    row = jax.lax.broadcasted_iota(jnp.int32, (tn, 1), 0)
    global_row = pl.program_id(0) * tile_n + row
    loss = jnp.where(global_row < n_total, loss, 0.0)

    partial = jnp.sum(loss).astype(jnp.float32)
    o_ref[...] = jnp.broadcast_to(partial, o_ref.shape)


def focal_loss(inputs, targets, gamma=2, alpha=None, tile_n=None):
    """inputs: (N, C) logits (any float dtype); targets: (N,) int class ids;
    alpha: None or length-C per-class weights. Returns scalar mean focal loss."""
    n, c = inputs.shape
    if not jnp.issubdtype(inputs.dtype, jnp.floating):
        inputs = inputs.astype(jnp.float32)
    dtype = inputs.dtype
    itemsize = jnp.dtype(dtype).itemsize

    # Row-tile sizing (no padding of N or C; logits stream in native dtype):
    #   * ~4 MiB per pipelined logits buffer (x2 for double-buffering),
    #   * the (tile_n, 1) int32 targets buffer lane-pads to tile_n*512 B/buffer,
    #   * f32 intermediates of the (tile_n, C) block live alongside,
    #   all of which stays well under the 48 MiB VMEM limit for tile_n <= 4096.
    if tile_n is None:
        budget_bytes = 4 * 1024 * 1024
        tile_n = budget_bytes // max(1, c * itemsize)
        tile_n = max(8, min(4096, (tile_n // 8) * 8))
    tile_n = max(8, (tile_n // 8) * 8)
    # Don't tile beyond the batch, and aim for >= 2 grid steps when the batch
    # allows it (keeps both v7x TensorCores busy; harmless on v5e/v6e).
    two_tile_cap = max(8, ((-(-n // 2)) + 7) // 8 * 8)
    tile_n = min(tile_n, max(8, (-(-n // 8)) * 8), two_tile_cap)

    num_tiles = -(-n // tile_n)

    t2d = targets.astype(jnp.int32).reshape(n, 1)

    has_alpha = alpha is not None
    args = [inputs, t2d]
    in_specs = [
        pl.BlockSpec((tile_n, c), lambda i: (i, 0)),   # class dim = full extent
        pl.BlockSpec((tile_n, 1), lambda i: (i, 0)),
    ]
    if has_alpha:
        w = jnp.asarray(alpha, jnp.float32).reshape(1, c)
        args.append(w)
        in_specs.append(pl.BlockSpec((1, c), lambda i: (0, 0)))

    kernel = functools.partial(_focal_loss_kernel, gamma=gamma,
                               has_alpha=has_alpha, n_total=n, tile_n=tile_n)
    out = pl.pallas_call(
        kernel,
        out_shape=jax.ShapeDtypeStruct((num_tiles, 8, 128), jnp.float32),
        grid=(num_tiles,),
        in_specs=in_specs,
        out_specs=pl.BlockSpec((1, 8, 128), lambda i: (i, 0, 0)),
        compiler_params=pltpu.CompilerParams(
            dimension_semantics=("parallel",),
            vmem_limit_bytes=48 * 1024 * 1024,
        ),
    )(*args)

    # Dense reduction (each (8,128) block holds 1024 copies of its partial);
    # mean over the true batch size N, matching reduction='none' + .mean().
    return jnp.sum(out) / jnp.float32(8 * 128 * n)


def _focal_loss_ref(logits, targets, gamma=2, alpha=None):
    logp = jax.nn.log_softmax(logits.astype(jnp.float32), axis=-1)
    nll = -jnp.take_along_axis(logp, targets[:, None], axis=-1)[:, 0]
    if alpha is None:
        ce = nll
    else:
        ce = jnp.asarray(alpha, jnp.float32)[targets] * nll
    return jnp.mean((1.0 - jnp.exp(-ce)) ** gamma * ce)


if __name__ == "__main__":
    key = jax.random.PRNGKey(0)
    k1, k2, k3, k4 = jax.random.split(key, 4)

    # Small canonical shape: batch=8, classes=32.
    N, C = 8, 32
    logits = jax.random.normal(k1, (N, C), dtype=jnp.float32)
    targets = jax.random.randint(k2, (N,), 0, C, dtype=jnp.int32)

    # alpha=None path (default FocalLoss(gamma=2))
    loss = jax.block_until_ready(focal_loss(logits, targets, gamma=2, alpha=None))
    ref = _focal_loss_ref(logits, targets, gamma=2, alpha=None)
    assert jnp.allclose(loss, ref, atol=1e-5, rtol=1e-5), (loss, ref)

    # alpha (class weights) path
    alpha = [0.5 + 0.01 * i for i in range(C)]
    loss_a = jax.block_until_ready(focal_loss(logits, targets, gamma=2, alpha=alpha))
    ref_a = _focal_loss_ref(logits, targets, gamma=2, alpha=alpha)
    assert jnp.allclose(loss_a, ref_a, atol=1e-5, rtol=1e-5), (loss_a, ref_a)

    # native-dtype streaming path (bf16 logits, f32 math inside the kernel)
    logits_bf16 = logits.astype(jnp.bfloat16)
    loss_b = jax.block_until_ready(focal_loss(logits_bf16, targets, gamma=2))
    ref_b = _focal_loss_ref(logits_bf16.astype(jnp.float32), targets, gamma=2)
    assert jnp.allclose(loss_b, ref_b, atol=1e-4, rtol=1e-4), (loss_b, ref_b)

    # multi-tile + ragged-last-tile masking path (N not a multiple of tile_n)
    N2 = 100
    logits2 = jax.random.normal(k3, (N2, C), dtype=jnp.float32)
    targets2 = jax.random.randint(k4, (N2,), 0, C, dtype=jnp.int32)
    loss_m = jax.block_until_ready(focal_loss(logits2, targets2, gamma=2))
    ref_m = _focal_loss_ref(logits2, targets2, gamma=2)
    assert jnp.allclose(loss_m, ref_m, atol=1e-5, rtol=1e-5), (loss_m, ref_m)

    # non-integer gamma (exercises the clamped float-pow branch)
    loss_g = jax.block_until_ready(focal_loss(logits2, targets2, gamma=1.5))
    ref_g = _focal_loss_ref(logits2, targets2, gamma=1.5)
    assert jnp.allclose(loss_g, ref_g, atol=1e-5, rtol=1e-5), (loss_g, ref_g)

    print("KERNEL_OK")
</pallas_src>

<mosaic_0001>
module attributes {stable_mosaic.version = 11 : i64} {
  func.func @_focal_loss_kernel(%arg0: i32, %arg1: memref<8x32xf32, #tpu.memory_space<vmem>>, %arg2: memref<8x1xi32, #tpu.memory_space<vmem>>, %arg3: memref<1x8x128xf32, #tpu.memory_space<vmem>>) attributes {dimension_semantics = [#tpu.dimension_semantics<parallel>], iteration_bounds = array<i64: 1>, scalar_prefetch = 0 : i64, scratch_operands = 0 : i64, tpu.core_type = #tpu.core_type<tc>, window_params = [{transform_indices = @transform_0, window_bounds = array<i64: 8, 32>}, {transform_indices = @transform_1, window_bounds = array<i64: 8, 1>}, {transform_indices = @transform_2, window_bounds = array<i64: 1, 8, 128>}]} {
    %c0 = arith.constant 0 : index
    %c0_0 = arith.constant 0 : index
    %0 = vector.load %arg1[%c0, %c0_0] : memref<8x32xf32, #tpu.memory_space<vmem>>, vector<8x32xf32>
    %c0_1 = arith.constant 0 : index
    %c0_2 = arith.constant 0 : index
    %1 = vector.load %arg2[%c0_1, %c0_2] : memref<8x1xi32, #tpu.memory_space<vmem>>, vector<8x1xi32>
    %2 = tpu.iota {dimensions = array<i32: 1>} : vector<8x32xi32>
    %3 = vector.broadcast %1 : vector<8x1xi32> to vector<8x32xi32>
    %4 = arith.cmpi eq, %2, %3 : vector<8x32xi32>
    %cst = arith.constant dense<0xFF800000> : vector<8xf32>
    %5 = vector.multi_reduction <maximumf>, %0, %cst [1] : vector<8x32xf32> to vector<8xf32>
    %6 = vector.shape_cast %5 : vector<8xf32> to vector<8x1xf32>
    %7 = vector.broadcast %6 : vector<8x1xf32> to vector<8x32xf32>
    %8 = arith.subf %0, %7 : vector<8x32xf32>
    %9 = math.exp %8 : vector<8x32xf32>
    %cst_3 = arith.constant dense<0.000000e+00> : vector<8xf32>
    %10 = vector.multi_reduction <add>, %9, %cst_3 [1] : vector<8x32xf32> to vector<8xf32>
    %11 = vector.shape_cast %10 : vector<8xf32> to vector<8x1xf32>
    %12 = math.log %11 : vector<8x1xf32>
    %13 = arith.addf %12, %6 : vector<8x1xf32>
    %cst_4 = arith.constant 0.000000e+00 : f32
    %14 = vector.broadcast %cst_4 : f32 to vector<8x32xf32>
    %15 = arith.select %4, %0, %14 : vector<8x32xi1>, vector<8x32xf32>
    %cst_5 = arith.constant dense<0.000000e+00> : vector<8xf32>
    %16 = vector.multi_reduction <add>, %15, %cst_5 [1] : vector<8x32xf32> to vector<8xf32>
    %17 = vector.shape_cast %16 : vector<8xf32> to vector<8x1xf32>
    %18 = arith.subf %13, %17 : vector<8x1xf32>
    %cst_6 = arith.constant 0.000000e+00 : f32
    %19 = vector.broadcast %cst_6 : f32 to vector<8x32xf32>
    %20 = arith.select %4, %9, %19 : vector<8x32xi1>, vector<8x32xf32>
    %cst_7 = arith.constant dense<0.000000e+00> : vector<8xf32>
    %21 = vector.multi_reduction <add>, %20, %cst_7 [1] : vector<8x32xf32> to vector<8xf32>
    %22 = vector.shape_cast %21 : vector<8xf32> to vector<8x1xf32>
    %23 = arith.divf %22, %11 : vector<8x1xf32>
    %cst_8 = arith.constant 1.000000e+00 : f32
    %24 = vector.broadcast %cst_8 : f32 to vector<8x1xf32>
    %25 = arith.subf %24, %23 : vector<8x1xf32>
    %cst_9 = arith.constant 0.000000e+00 : f32
    %26 = vector.broadcast %cst_9 : f32 to vector<8x1xf32>
    %27 = arith.maximumf %25, %26 : vector<8x1xf32>
    %28 = arith.mulf %27, %27 : vector<8x1xf32>
    %29 = arith.mulf %28, %18 : vector<8x1xf32>
    %30 = tpu.iota {dimensions = array<i32: 0>} : vector<8x1xi32>
    %c8_i32 = arith.constant 8 : i32
    %31 = arith.muli %arg0, %c8_i32 : i32
    %32 = vector.broadcast %31 : i32 to vector<8x1xi32>
    %33 = arith.addi %32, %30 : vector<8x1xi32>
    %c8_i32_10 = arith.constant 8 : i32
    %34 = vector.broadcast %c8_i32_10 : i32 to vector<8x1xi32>
    %35 = arith.cmpi slt, %33, %34 : vector<8x1xi32>
    %cst_11 = arith.constant 0.000000e+00 : f32
    %36 = vector.broadcast %cst_11 : f32 to vector<8x1xf32>
    %37 = arith.select %35, %29, %36 : vector<8x1xi1>, vector<8x1xf32>
    %38 = vector.shape_cast %37 : vector<8x1xf32> to vector<1x8x1xf32>
    %cst_12 = arith.constant dense<0.000000e+00> : vector<1xf32>
    %39 = vector.multi_reduction <add>, %38, %cst_12 [1, 2] : vector<1x8x1xf32> to vector<1xf32>
    %40 = vector.shape_cast %39 : vector<1xf32> to vector<1x1x1xf32>
    %41 = vector.extract %40[0, 0, 0] : f32 from vector<1x1x1xf32>
    %42 = vector.broadcast %41 : f32 to vector<1x8x128xf32>
    %c0_13 = arith.constant 0 : index
    %c0_14 = arith.constant 0 : index
    %c0_15 = arith.constant 0 : index
    %43 = vector.load %arg3[%c0_13, %c0_14, %c0_15] : memref<1x8x128xf32, #tpu.memory_space<vmem>>, vector<1x8x128xf32>
    tpu.vector_store %arg3[%c0_13, %c0_14, %c0_15], %42 {strides = array<i32>} : memref<1x8x128xf32, #tpu.memory_space<vmem>>, vector<1x8x128xf32>,
    return
  }
  func.func @transform_0(%arg0: i32) -> (i32, i32) {
    %c0_i32 = arith.constant 0 : i32
    %c0_i32_0 = arith.constant 0 : i32
    return %arg0, %c0_i32 : i32, i32
  }
  func.func @transform_1(%arg0: i32) -> (i32, i32) {
    %c0_i32 = arith.constant 0 : i32
    %c0_i32_0 = arith.constant 0 : i32
    return %arg0, %c0_i32 : i32, i32
  }
  func.func @transform_2(%arg0: i32) -> (i32, i32, i32) {
    %c0_i32 = arith.constant 0 : i32
    %c0_i32_0 = arith.constant 0 : i32
    %c0_i32_1 = arith.constant 0 : i32
    return %arg0, %c0_i32, %c0_i32_0 : i32, i32, i32
  }
}

</mosaic_0001>

<bundles_post_ra>
// kernel: tpu_custom_call.1
= control target key start
LH: loop header
LB: loop body
LE: loop exit
PB: predicated region body
PF: predicated region fallthrough
CT: control target
= control target key end

     0   :  { %vm20_vm0 = vcmask 261120   ;;  %s156_s0 = inlined_call_operand.vmem [shape: f32[8,32], index: 0, kind: input, shape index: {}]   ;;  %s157_s1 = inlined_call_operand.vmem [shape: s32[8,1], index: 1, kind: input, shape index: {}]   ;;  %s158_s2 = inlined_call_operand.hbm [shape: f32[1,8,128], index: 2, kind: output, shape index: {}]  }
   0x1   :  { %v12_v0 = vld [vmem:[%s156_s0] sm:$0xff] }
   0x2   :  { %7 = vsyncpa [#allocation3], 0  ;;  %v21_v1 = vsel %vm20_vm0, %v12_v0, -inf  ;;  %v117_v2 = vmov 0   ;;  %v13_v3 = vld [vmem:[%s157_s1] sm:$0xff]  ;;  %v14_v7 = vlaneseq  ;;  %vm55_vm2 = vcmask 7168  }
   0x3   :  { %86 = vset.pattern.permute.xlu0 %v117_v2  ;;  %s118_s0 = smov [#allocation2]  }
   0x4   :  { %22 = vmax.xlane.f32.xlu0 %v21_v1  ;;  %v15_v8 = vand.u32 127, %v14_v7  ;;  %s74_s1 = sshll.u32 %s118_s0, 4  ;;  %s75_s1 = int_to_ptr.vmem [resolvable:$true] %s74_s1 }
   0x5   :  { %s93_s14 = scalar_lea.vmem %s75_s1, 128  ;;  %p98_p1 = scmp.lt.s32.totalorder %s75_s1, %s75_s1 }
   0x6   :  { %p94_p0 = scmp.ne.s32.totalorder %s75_s1, %s93_s14  ;;  %p99_p2 = scmp.lt.s32.totalorder %s93_s14, %s93_s14 }
   0x8   :  { %p100_p3 = por %p99_p2, %p98_p1 }
   0xa   :  { %p101_p4 = pnand %p100_p3, %p94_p0 }
  0x1a   :  { %17 = vperm.xlu0 %86, %v13_v3  }
  0x91   :  { %v23_v4 = vpop.xlane.xlu0 %22 }
  0x92   :  { %v24_v5 = vsub.f32 %v12_v0, %v23_v4 }
  0x94   :  { %v25_v6 = vmul.f32 1.442695, %v24_v5 }
  0x96   :  { %87 = vpow2.f32 %v25_v6 }
  0x99   :  { %v18_v9 = vpop.permute.xlu0 %17 }
  0x9a   :  { %vm19_vm1 = vcmp.eq.s32.totalorder %v15_v8, %v18_v9 }
  0x9b   :  { %v33_v13 = vsel %vm19_vm1, %v12_v0, 0.0 }
  0x9c   :  { %v34_v15 = vsel %vm20_vm0, %v33_v13, 0.0 }
  0xa0   :  { %v88_v10 = vpop.eup %87 }
  0xa1   :  { %v27_v11 = vsel %vm20_vm0, %v88_v10, 0.0  ;;  %v38_v12 = vsel %vm19_vm1, %v88_v10, 0.0 }
  0xa2   :  { %28 = vadd.xlane.f32.xlu1 %v27_v11  ;;  %v39_v14 = vsel %vm20_vm0, %v38_v12, 0.0 }
  0xa6   :  { %40 = vadd.xlane.f32.xlu1 %v39_v14 }
  0xaa   :  { %35 = vadd.xlane.f32.xlu1 %v34_v15 }
 0x12f   :  { %v29_v16 = vpop.xlane.xlu1 %28 }
 0x130   :  { %89 = vlog2.f32 %v29_v16 }
 0x131   :  { %91 = vrcp.f32 %v29_v16 }
 0x133   :  { %v41_v19 = vpop.xlane.xlu1 %40 }
 0x137   :  { %v36_v25 = vpop.xlane.xlu1 %35 }
 0x13a   :  { %v90_v17 = vpop.eup %89 }
 0x13b   :  { %v92_v18 = vpop.eup %91  ;;  %v31_v20 = vmul.f32 0.6931472, %v90_v17 }
 0x13c   :  { %v43_v21 = vmul.f32 %v92_v18, %v41_v19 }
 0x13d   :  { %v32_v23 = vadd.f32 %v31_v20, %v23_v4 }
 0x13e   :  { %v44_v22 = vsub.f32 1.0, %v43_v21 }
 0x13f   :  { %v37_v27 = vsub.f32 %v32_v23, %v36_v25 }
 0x140   :  { %v45_v24 = vmax.f32 %v44_v22, 0.0 }
 0x142   :  { %v46_v26 = vmul.f32 %v45_v24, %v45_v24 }
 0x144   :  { %v47_v28 = vmul.f32 %v46_v26, %v37_v27 }
 0x146   :  { %v56_v29 = vsel %vm55_vm2, %v47_v28, 0.0 }
 0x147   :  { %57 = vadd.xlane.f32.xlu1 %v56_v29 }
 0x1d4   :  { %v58_v30 = vpop.xlane.xlu1 %57 }
 0x1d5   :  { %v59_v31 = vrot.slane %v58_v30, 4 }
 0x1d7   :  { %v60_v32 = vadd.f32 %v59_v31, %v58_v30 }
 0x1d9   :  { %v61_v33 = vrot.slane %v60_v32, 2 }
 0x1db   :  { %v62_v34 = vadd.f32 %v61_v33, %v60_v32 }
 0x1dd   :  { %v63_v35 = vrot.slane %v62_v34, 1 }
 0x1df   :  { %v64_v36 = vadd.f32 %v63_v35, %v62_v34 }
 0x1e1   :  { %82 = vpush %v64_v36 }
 0x212   :  { %s83_s13 = spop %82 }
 0x213   :  { %v66_v37 = vstv %s83_s13 }
 0x214   :  { %67 = vst [vmem:[#allocation2] sm:$0xff] %v66_v37 }
 0x215   :  { %104 = shalt.err (!%p101_p4)
}
 0x216   :  { %s105_s17 = scalar_lea.hbm %s158_s2, 128 }
 0x217   :  { %p106_p5 = scmp.ne.s32.totalorder %s158_s2, %s105_s17  ;;  %p109_p6 = scmp.lt.u32.totalorder %s105_s17, %s158_s2 }
 0x219   :  { %p111_p7 = pnand %p109_p6, %p106_p5 }
 0x21b   :  { %114 = shalt.err (!%p111_p7)
}
 0x21c   :  { %77 = dma.vmem_to_hbm [thread:$0]  %s75_s1, 128, %s158_s2, [#allocation3]  }
 0x21d   :  { %115 = dma.done.wait [#allocation3], 128  }
 0x21e   :  { %116 = vsyncadd [#allocation3], 4294967168 }
 0x21f   :  { %81 = vsyncpa [#allocation3], 1 }

</bundles_post_ra>
